<compile_context>
chip_gen: v6e
topology: v6e:2x2x1
jax: 0.10.0
libtpu: 0.0.40
codegen_flags: <defaults>
</compile_context>

<pallas_src>
import jax
import jax.numpy as jnp
from jax.experimental import pallas as pl
from jax.experimental.pallas import tpu as pltpu


def _copy_kernel(x_ref, o_ref):
    # The chomp is fully expressed in the BlockSpecs/grid; the body is a
    # single lane-dense memcpy (no in-kernel slicing).
    o_ref[...] = x_ref[...]


def _sublane_multiple(dtype) -> int:
    # Native sublane packing: 8 rows/vreg at 32-bit, 16 at 16-bit, 32 at 8-bit.
    itemsize = jnp.dtype(dtype).itemsize
    return max(8, 32 // max(itemsize, 1))


def _round_up(x: int, m: int) -> int:
    return ((x + m - 1) // m) * m


def _round_down(x: int, m: int) -> int:
    return (x // m) * m


def chomp1d(x: jax.Array, chomp_size: int, *,
            block_byte_budget: int = 4 * 1024 * 1024) -> jax.Array:
    """Pallas equivalent of Chomp1d(chomp_size)(x) for x of shape (N, C, L)."""
    assert x.ndim == 3, "expected (N, C, L)"
    n, c, l = x.shape
    assert 0 <= chomp_size < l, "chomp_size must be in [0, L)"

    if chomp_size == 0:
        # Literal PyTorch `x[:, :, :-0]` is an empty slice; mirror it exactly.
        return x[:, :, :0]

    l_out = l - chomp_size
    rows = n * c
    itemsize = jnp.dtype(x.dtype).itemsize

    # Flatten to (rows, L): rows -> sublane axis, L -> lane axis.
    # (Metadata-only for a contiguous input.)
    x2 = x.reshape(rows, l)

    sub = _sublane_multiple(x.dtype)
    rows_pad = _round_up(rows, sub)
    l_out_pad = _round_up(l_out, 128)

    # --- lane tile: collapse the lane grid axis whenever it fits the budget
    # at the minimum (one-sublane-group) row-band height.
    max_tl = max(_round_down(block_byte_budget // (sub * itemsize), 128), 128)
    if l_out_pad <= max_tl:
        tl = l_out_pad                      # grid lane dim = 1, contiguous rows
    else:
        # Split the lane axis; balance tiles so the last tile's over-read of
        # the chomped tail / padding is small, but keep runs as long as we can.
        n_lane_tiles = pl.cdiv(l_out_pad, max_tl)
        tl = min(_round_up(pl.cdiv(l_out, n_lane_tiles), 128), max_tl)

    # --- row tile: fill the remaining block budget, sublane-aligned.
    tr = _round_down(block_byte_budget // (tl * itemsize), sub)
    tr = max(tr, sub)
    tr = min(tr, rows_pad)

    grid = (pl.cdiv(rows, tr), pl.cdiv(l_out, tl))

    out2 = pl.pallas_call(
        _copy_kernel,
        out_shape=jax.ShapeDtypeStruct((rows, l_out), x.dtype),
        grid=grid,
        # Input index_map ranges only over the kept L_out prefix, so the
        # chomped tail is never DMA'd (beyond the final tile's padding).
        in_specs=[pl.BlockSpec((tr, tl), lambda i, j: (i, j))],
        out_specs=pl.BlockSpec((tr, tl), lambda i, j: (i, j)),
        compiler_params=pltpu.CompilerParams(
            dimension_semantics=("parallel", "parallel"),
            vmem_limit_bytes=32 * 1024 * 1024),
        cost_estimate=pl.CostEstimate(
            flops=0, transcendentals=0,
            bytes_accessed=2 * rows * l_out * itemsize),
    )(x2)

    return out2.reshape(n, c, l_out)


if __name__ == "__main__":
    key = jax.random.PRNGKey(0)

    # Small TCN-like activation: (N, C, L) with causal-padding chomp.
    N, C, L = 2, 4, 16
    chomp_size = 3  # (kernel_size - 1) * dilation padding in a TCN block

    x = jax.random.normal(key, (N, C, L), dtype=jnp.float32)
    y = jax.block_until_ready(chomp1d(x, chomp_size))

    ref = x[:, :, :-chomp_size]
    assert y.shape == (N, C, L - chomp_size)
    assert y.dtype == x.dtype
    assert jnp.array_equal(y, ref), "mismatch vs reference slice"

    # Second check: force a multi-tile grid (tiny block budget -> 128-wide
    # lane tiles, partial final lane block) to exercise the tiled path.
    key2 = jax.random.PRNGKey(1)
    x2 = jax.random.normal(key2, (2, 4, 150), dtype=jnp.float32)
    y2 = jax.block_until_ready(chomp1d(x2, 7, block_byte_budget=8 * 128 * 4))
    assert jnp.array_equal(y2, x2[:, :, :-7]), "mismatch vs reference slice (tiled)"

    print("KERNEL_OK")
</pallas_src>

<mosaic_0001>
module attributes {stable_mosaic.version = 11 : i64} {
  func.func @_copy_kernel(%arg0: i32, %arg1: i32, %arg2: memref<8x128xf32, #tpu.memory_space<vmem>>, %arg3: memref<8x128xf32, #tpu.memory_space<vmem>>) attributes {dimension_semantics = [#tpu.dimension_semantics<parallel>, #tpu.dimension_semantics<parallel>], iteration_bounds = array<i64: 1, 1>, scalar_prefetch = 0 : i64, scratch_operands = 0 : i64, tpu.core_type = #tpu.core_type<tc>, window_params = [{transform_indices = @transform_0, window_bounds = array<i64: 8, 128>}, {transform_indices = @transform_1, window_bounds = array<i64: 8, 128>}]} {
    %c0 = arith.constant 0 : index
    %c0_0 = arith.constant 0 : index
    %0 = vector.load %arg2[%c0, %c0_0] : memref<8x128xf32, #tpu.memory_space<vmem>>, vector<8x128xf32>
    %c0_1 = arith.constant 0 : index
    %c0_2 = arith.constant 0 : index
    %1 = vector.load %arg3[%c0_1, %c0_2] : memref<8x128xf32, #tpu.memory_space<vmem>>, vector<8x128xf32>
    tpu.vector_store %arg3[%c0_1, %c0_2], %0 {strides = array<i32>} : memref<8x128xf32, #tpu.memory_space<vmem>>, vector<8x128xf32>,
    return
  }
  func.func @transform_0(%arg0: i32, %arg1: i32) -> (i32, i32) {
    %c0_i32 = arith.constant 0 : i32
    return %arg0, %arg1 : i32, i32
  }
  func.func @transform_1(%arg0: i32, %arg1: i32) -> (i32, i32) {
    %c0_i32 = arith.constant 0 : i32
    return %arg0, %arg1 : i32, i32
  }
}

</mosaic_0001>

<bundles_post_ra>
// kernel: tpu_custom_call.1
= control target key start
LH: loop header
LB: loop body
LE: loop exit
PB: predicated region body
PF: predicated region fallthrough
CT: control target
= control target key end

     0   :  { %6 = vsyncpa [#allocation3], 0  ;;  %s102_s0 = inlined_call_operand.hbm [shape: f32[8,16], index: 0, kind: input, shape index: {}]   ;;  %s103_s1 = inlined_call_operand.hbm [shape: f32[8,13], index: 1, kind: output, shape index: {}]  }
   0x1   :  { %7 = vsyncpa [#allocation4], 0  ;;  %s84_s6 = smov [#allocation2]  }
   0x2   :  { %s14_s7 = sshll.u32 %s84_s6, 4  ;;  %s15_s7 = int_to_ptr.vmem [resolvable:$true] %s14_s7 }
   0x3   :  { %s48_s8 = scalar_lea.vmem %s15_s7, 128  ;;  %p53_p1 = scmp.lt.s32.totalorder %s15_s7, %s15_s7 }
   0x4   :  { %p49_p0 = scmp.ne.s32.totalorder %s15_s7, %s48_s8  ;;  %p54_p2 = scmp.lt.s32.totalorder %s48_s8, %s48_s8 }
   0x6   :  { %p55_p3 = por %p54_p2, %p53_p1 }
   0x8   :  { %p56_p4 = pnand %p55_p3, %p49_p0 }
   0xa   :  { %59 = shalt.err (!%p56_p4)
}
   0xb   :  { %17 = dma.hbm_to_vmem [thread:$0]  %s102_s0, 128, %s15_s7, [#allocation3]  }
   0xc   :  { %80 = dma.done.wait [#allocation3], 128  }
   0xd   :  { %81 = vsyncadd [#allocation3], 4294967168  ;;  %s85_s11 = smov [#allocation5]   ;;  %v21_v0 = vld [vmem:[#allocation2] sm:$0xff] }
   0xe   :  { %s29_s12 = sshll.u32 %s85_s11, 4  ;;  %22 = vst [vmem:[#allocation5] sm:$0xff] %v21_v0  ;;  %s30_s12 = int_to_ptr.vmem [resolvable:$true] %s29_s12 }
   0xf   :  { %s60_s13 = scalar_lea.vmem %s30_s12, 128  ;;  %p65_p6 = scmp.lt.s32.totalorder %s30_s12, %s30_s12 }
  0x10   :  { %p61_p5 = scmp.ne.s32.totalorder %s30_s12, %s60_s13  ;;  %p66_p7 = scmp.lt.s32.totalorder %s60_s13, %s60_s13 }
  0x12   :  { %p67_p8 = por %p66_p7, %p65_p6 }
  0x14   :  { %p68_p9 = pnand %p67_p8, %p61_p5 }
  0x16   :  { %71 = shalt.err (!%p68_p9)
}
  0x17   :  { %32 = dma.vmem_to_hbm [thread:$0]  %s30_s12, 128, %s103_s1, [#allocation4]  }
  0x18   :  { %82 = dma.done.wait [#allocation4], 128  }
  0x19   :  { %83 = vsyncadd [#allocation4], 4294967168 }
  0x1a   :  { %36 = vsyncpa [#allocation3], 1 }
  0x1b   :  { %37 = vsyncpa [#allocation4], 1 }

</bundles_post_ra>
